<compile_context>
chip_gen: v6e
topology: v6e:2x2x1
jax: 0.10.0
libtpu: 0.0.40
codegen_flags: <defaults>
</compile_context>

<pallas_src>
import functools

import jax
import jax.numpy as jnp
from jax.experimental import pallas as pl
from jax.experimental.pallas import tpu as pltpu

_LANE = 128


def _iou_sums_kernel(x_ref, t_ref, inter_ref, total_ref, inter_acc, total_acc,
                     *, rows, block_rows, steps, num_full, emit_cold):
    """Accumulate IoU partial sums; emit per-core scalars on the last step.

    Grid = (split, steps).  Axis 0 is the 'parallel' core split; axis 1 the
    'arbitrary' reduction over this core's row-tiles.  (8, 128) VMEM scratch
    accumulators persist across grid steps; the (1, 8, 128) output blocks are
    written once per core, on its last step, with the fully-reduced scalar.
    """
    c = pl.program_id(0)
    i = pl.program_id(1)
    # Unclamped logical block id.  int32 math: blk * block_rows stays well
    # below 2**31 for any realistic UNet tensor (< 2.7e11 elements).
    blk = c * steps + i

    @pl.when(i == 0)
    def _():
        inter_acc[...] = jnp.zeros_like(inter_acc)
        total_acc[...] = jnp.zeros_like(total_acc)

    # torch.round(torch.sigmoid(x)) == 1  <=>  x > 0.  (x == 0 -> sigmoid 0.5
    # -> round-half-to-even -> 0, same as x > 0 being False.)  Compare in the
    # input's native dtype; cast to f32 only in-register.
    p = (x_ref[...] > 0).astype(jnp.float32)
    t = t_ref[...].astype(jnp.float32)

    g = block_rows // 8

    def _accumulate(pv, tv):
        # Leading-axis-only reductions: pure VPU adds that keep the (8, lane)
        # sublane/lane structure.  No per-step cross-lane XLU work.
        inter_acc[...] += jnp.sum((pv * tv).reshape(g, 8, _LANE), axis=0)
        total_acc[...] += jnp.sum((pv + tv).reshape(g, 8, _LANE), axis=0)

    if not emit_cold:
        # Common aligned case: every block is full and every grid step is a
        # real block -- no masks, no iotas, no selects.
        _accumulate(p, t)
    else:
        @pl.when(blk < num_full)
        def _():  # hot path: full interior block.
            _accumulate(p, t)

        @pl.when(blk >= num_full)
        def _():  # cold path: ragged tail block and/or phantom step.
            # Only whole out-of-range rows need masking (they may be NaN/Inf
            # garbage in BOTH x and t): the in-array lane-tail padding added
            # by the wrapper is zero and contributes nothing on its own.  A
            # phantom step of an uneven core split gets rows - blk*block_rows
            # <= 0, i.e. everything masked.
            rid = jax.lax.broadcasted_iota(jnp.int32, (block_rows, _LANE), 0)
            valid = rid < (rows - blk * block_rows)
            _accumulate(jnp.where(valid, p, 0.0), jnp.where(valid, t, 0.0))

    @pl.when(i == steps - 1)
    def _():
        # Fold the cross-lane reduce into the last grid step (one XLU reduce
        # per core; free relative to the DMA-bound streaming steps) so the
        # XLA epilogue only reads `split` scalars.
        inter_ref[...] = jnp.full(inter_ref.shape, jnp.sum(inter_acc[...]),
                                  jnp.float32)
        total_ref[...] = jnp.full(total_ref.shape, jnp.sum(total_acc[...]),
                                  jnp.float32)


def _sublane_multiple(dtype):
    # Required sublane multiple for the block shape: f32 -> 8, bf16 -> 16,
    # int8/bool -> 32 (packed sublane tiling).
    return max(8, 32 // jnp.dtype(dtype).itemsize)


def iou_metric(inputs, targets, smooth=1.0, *, max_block_rows=4096):
    """Pallas implementation of IoU_metric.forward.

    Accepts logits in their native dtype (f32/bf16) and targets in any dtype
    (f32/bf16/int8/bool); nothing is up-cast host-side, so HBM traffic follows
    the caller's dtypes (the kernel is HBM-roofline bound on all generations).
    """
    x = inputs.reshape(-1)            # reshape only: no HBM copy, no upcast
    t = targets.reshape(-1)
    n = x.shape[0]

    # Pad the flat length to a whole number of 128-lane rows (rare for NCHW
    # UNet outputs).  Zero padding contributes nothing to either sum, so it
    # needs no in-kernel mask.
    if n % _LANE != 0:
        pad = _LANE - n % _LANE
        x = jnp.pad(x, (0, pad))
        t = jnp.pad(t, (0, pad))
    rows = x.shape[0] // _LANE
    x2 = x.reshape(rows, _LANE)
    t2 = t.reshape(rows, _LANE)

    # Large lane-dense tiles to amortize per-step grid overhead.
    m = max(_sublane_multiple(x2.dtype), _sublane_multiple(t2.dtype))
    max_rows_m = max(m, (max_block_rows // m) * m)
    block_rows = min(max_rows_m, pl.cdiv(rows, m) * m)

    # Tiny inputs only: make the array exactly one full block (cheap copy of a
    # few KiB) so block_shape never exceeds the array and no mask is needed.
    if rows < block_rows:
        x2 = jnp.pad(x2, ((0, block_rows - rows), (0, 0)))
        t2 = jnp.pad(t2, ((0, block_rows - rows), (0, 0)))
        rows = block_rows

    num_blocks = pl.cdiv(rows, block_rows)
    num_full = rows // block_rows

    # Shard the reduction across two TensorCores (v7x megacore) whenever there
    # is more than one block; odd block counts use a clamped index map plus one
    # fully-masked phantom step.  Runs serially (and harmlessly) on v5e/v6e.
    split = 2 if num_blocks >= 2 else 1
    steps = pl.cdiv(num_blocks, split)
    has_phantom = split * steps > num_blocks
    emit_cold = (num_full != num_blocks) or has_phantom

    def in_index_map(c, i):
        # Clamp so the phantom step of an uneven split re-reads the last real
        # block; its contribution is masked out in-kernel.
        return (jnp.minimum(c * steps + i, num_blocks - 1), 0)

    kernel = functools.partial(
        _iou_sums_kernel, rows=rows, block_rows=block_rows, steps=steps,
        num_full=num_full, emit_cold=emit_cold)

    # Scoped-VMEM cap derived from the real window size: 2 inputs x 2 pipeline
    # buffers, plus slack.  Keep >= 32 MiB (v5e scoped default is 16 MiB) and
    # <= 48 MiB (v7x has only 64 MiB physical VMEM per TensorCore).
    tile_bytes = block_rows * _LANE * (x2.dtype.itemsize + t2.dtype.itemsize)
    vmem_limit = int(min(48 << 20, max(32 << 20, 2 * tile_bytes + (4 << 20))))

    bytes_accessed = (x2.size * x2.dtype.itemsize
                      + t2.size * t2.dtype.itemsize
                      + 2 * split * 8 * _LANE * 4)

    inter_out, total_out = pl.pallas_call(
        kernel,
        out_shape=(jax.ShapeDtypeStruct((split, 8, _LANE), jnp.float32),
                   jax.ShapeDtypeStruct((split, 8, _LANE), jnp.float32)),
        grid_spec=pltpu.PrefetchScalarGridSpec(
            num_scalar_prefetch=0,
            grid=(split, steps),
            in_specs=[
                pl.BlockSpec((block_rows, _LANE), in_index_map),
                pl.BlockSpec((block_rows, _LANE), in_index_map),
            ],
            out_specs=(
                pl.BlockSpec((1, 8, _LANE), lambda c, i: (c, 0, 0)),
                pl.BlockSpec((1, 8, _LANE), lambda c, i: (c, 0, 0)),
            ),
            scratch_shapes=[
                pltpu.VMEM((8, _LANE), jnp.float32),   # intersection accum
                pltpu.VMEM((8, _LANE), jnp.float32),   # total accum
            ],
        ),
        compiler_params=pltpu.CompilerParams(
            dimension_semantics=("parallel", "arbitrary"),
            vmem_limit_bytes=vmem_limit),
        cost_estimate=pl.CostEstimate(
            flops=5 * rows * _LANE, transcendentals=0,
            bytes_accessed=bytes_accessed),
    )(x2, t2)

    # Tiny epilogue: per-core scalars only (the heavy reduce happened in-kernel).
    intersection = jnp.sum(inter_out[:, 0, 0])
    total_s = jnp.sum(total_out[:, 0, 0])
    union = total_s - intersection
    return (intersection + smooth) / (union + smooth)


def _iou_reference(inputs, targets, smooth=1.0):
    p = jnp.round(jax.nn.sigmoid(inputs.reshape(-1).astype(jnp.float32)))
    t = targets.reshape(-1).astype(jnp.float32)
    intersection = jnp.sum(p * t)
    total = jnp.sum(p + t)
    union = total - intersection
    return (intersection + smooth) / (union + smooth)


def _check(x, t, **kw):
    got = jax.block_until_ready(iou_metric(x, t, **kw))
    want = _iou_reference(x, t)
    assert jnp.allclose(got, want, atol=1e-5, rtol=1e-5), (got, want)


if __name__ == "__main__":
    key = jax.random.PRNGKey(0)
    k1, k2, k3, k4, k5, k6 = jax.random.split(key, 6)

    # Primary small UNet-like shape: NCHW logits + binary mask.
    x = jax.random.normal(k1, (2, 4, 16, 16), dtype=jnp.float32)
    targets = (jax.random.uniform(k2, (2, 4, 16, 16)) > 0.5).astype(jnp.float32)
    _check(x, targets)

    # Ragged lane count (n % 128 != 0) -> zero-padded, single full block.
    x_odd = jax.random.normal(k3, (1, 1, 9, 13), dtype=jnp.float32)
    t_odd = (jax.random.uniform(k4, (1, 1, 9, 13)) > 0.5).astype(jnp.float32)
    _check(x_odd, t_odd)

    # Multi-block, odd block count: exercises the 2-core split, the clamped
    # index map + fully-masked phantom step, and the ragged-tail row mask.
    x_big = jax.random.normal(k5, (1, 2, 288, 272), dtype=jnp.float32)
    t_big = (jax.random.uniform(k6, (1, 2, 288, 272)) > 0.5).astype(jnp.float32)
    _check(x_big, t_big, max_block_rows=512)

    print("KERNEL_OK")
</pallas_src>

<mosaic_0001>
module attributes {stable_mosaic.version = 11 : i64} {
  func.func @_iou_sums_kernel(%arg0: i32, %arg1: i32, %arg2: memref<16x128xf32, #tpu.memory_space<vmem>>, %arg3: memref<16x128xf32, #tpu.memory_space<vmem>>, %arg4: memref<1x8x128xf32, #tpu.memory_space<vmem>>, %arg5: memref<1x8x128xf32, #tpu.memory_space<vmem>>, %arg6: memref<8x128xf32, #tpu.memory_space<vmem>>, %arg7: memref<8x128xf32, #tpu.memory_space<vmem>>) attributes {dimension_semantics = [#tpu.dimension_semantics<parallel>, #tpu.dimension_semantics<arbitrary>], iteration_bounds = array<i64: 1, 1>, scalar_prefetch = 0 : i64, scratch_operands = 2 : i64, tpu.core_type = #tpu.core_type<tc>, window_params = [{transform_indices = @transform_0, window_bounds = array<i64: 16, 128>}, {transform_indices = @transform_1, window_bounds = array<i64: 16, 128>}, {transform_indices = @transform_2, window_bounds = array<i64: 1, 8, 128>}, {transform_indices = @transform_3, window_bounds = array<i64: 1, 8, 128>}]} {
    %c0_i32 = arith.constant 0 : i32
    %0 = arith.cmpi eq, %arg1, %c0_i32 : i32
    %1 = arith.extui %0 : i1 to i32
    %c0_i32_0 = arith.constant 0 : i32
    %2 = arith.cmpi ne, %1, %c0_i32_0 : i32
    scf.if %2 {
      %cst_16 = arith.constant 0.000000e+00 : f32
      %24 = vector.broadcast %cst_16 : f32 to vector<8x128xf32>
      %c0_17 = arith.constant 0 : index
      %c0_18 = arith.constant 0 : index
      %25 = vector.load %arg6[%c0_17, %c0_18] : memref<8x128xf32, #tpu.memory_space<vmem>>, vector<8x128xf32>
      tpu.vector_store %arg6[%c0_17, %c0_18], %24 {strides = array<i32>} : memref<8x128xf32, #tpu.memory_space<vmem>>, vector<8x128xf32>,
      %cst_19 = arith.constant 0.000000e+00 : f32
      %26 = vector.broadcast %cst_19 : f32 to vector<8x128xf32>
      %c0_20 = arith.constant 0 : index
      %c0_21 = arith.constant 0 : index
      %27 = vector.load %arg7[%c0_20, %c0_21] : memref<8x128xf32, #tpu.memory_space<vmem>>, vector<8x128xf32>
      tpu.vector_store %arg7[%c0_20, %c0_21], %26 {strides = array<i32>} : memref<8x128xf32, #tpu.memory_space<vmem>>, vector<8x128xf32>,
    } else {
    }
    %c0 = arith.constant 0 : index
    %c0_1 = arith.constant 0 : index
    %3 = vector.load %arg2[%c0, %c0_1] : memref<16x128xf32, #tpu.memory_space<vmem>>, vector<16x128xf32>
    %cst = arith.constant 0.000000e+00 : f32
    %4 = vector.broadcast %cst : f32 to vector<16x128xf32>
    %5 = arith.cmpf ogt, %3, %4 : vector<16x128xf32>
    %6 = arith.extui %5 : vector<16x128xi1> to vector<16x128xi32>
    %7 = arith.sitofp %6 : vector<16x128xi32> to vector<16x128xf32>
    %c0_2 = arith.constant 0 : index
    %c0_3 = arith.constant 0 : index
    %8 = vector.load %arg3[%c0_2, %c0_3] : memref<16x128xf32, #tpu.memory_space<vmem>>, vector<16x128xf32>
    %c0_4 = arith.constant 0 : index
    %c0_5 = arith.constant 0 : index
    %9 = vector.load %arg6[%c0_4, %c0_5] : memref<8x128xf32, #tpu.memory_space<vmem>>, vector<8x128xf32>
    %10 = arith.mulf %7, %8 : vector<16x128xf32>
    %11 = vector.shape_cast %10 : vector<16x128xf32> to vector<2x8x128xf32>
    %cst_6 = arith.constant dense<0.000000e+00> : vector<8x128xf32>
    %12 = vector.multi_reduction <add>, %11, %cst_6 [0] : vector<2x8x128xf32> to vector<8x128xf32>
    %13 = arith.addf %9, %12 : vector<8x128xf32>
    %c0_7 = arith.constant 0 : index
    %c0_8 = arith.constant 0 : index
    %14 = vector.load %arg6[%c0_7, %c0_8] : memref<8x128xf32, #tpu.memory_space<vmem>>, vector<8x128xf32>
    tpu.vector_store %arg6[%c0_7, %c0_8], %13 {strides = array<i32>} : memref<8x128xf32, #tpu.memory_space<vmem>>, vector<8x128xf32>,
    %c0_9 = arith.constant 0 : index
    %c0_10 = arith.constant 0 : index
    %15 = vector.load %arg7[%c0_9, %c0_10] : memref<8x128xf32, #tpu.memory_space<vmem>>, vector<8x128xf32>
    %16 = arith.addf %7, %8 : vector<16x128xf32>
    %17 = vector.shape_cast %16 : vector<16x128xf32> to vector<2x8x128xf32>
    %cst_11 = arith.constant dense<0.000000e+00> : vector<8x128xf32>
    %18 = vector.multi_reduction <add>, %17, %cst_11 [0] : vector<2x8x128xf32> to vector<8x128xf32>
    %19 = arith.addf %15, %18 : vector<8x128xf32>
    %c0_12 = arith.constant 0 : index
    %c0_13 = arith.constant 0 : index
    %20 = vector.load %arg7[%c0_12, %c0_13] : memref<8x128xf32, #tpu.memory_space<vmem>>, vector<8x128xf32>
    tpu.vector_store %arg7[%c0_12, %c0_13], %19 {strides = array<i32>} : memref<8x128xf32, #tpu.memory_space<vmem>>, vector<8x128xf32>,
    %c0_i32_14 = arith.constant 0 : i32
    %21 = arith.cmpi eq, %arg1, %c0_i32_14 : i32
    %22 = arith.extui %21 : i1 to i32
    %c0_i32_15 = arith.constant 0 : i32
    %23 = arith.cmpi ne, %22, %c0_i32_15 : i32
    scf.if %23 {
      %c0_16 = arith.constant 0 : index
      %c0_17 = arith.constant 0 : index
      %24 = vector.load %arg6[%c0_16, %c0_17] : memref<8x128xf32, #tpu.memory_space<vmem>>, vector<8x128xf32>
      %25 = vector.shape_cast %24 : vector<8x128xf32> to vector<1x8x128xf32>
      %cst_18 = arith.constant dense<0.000000e+00> : vector<1xf32>
      %26 = vector.multi_reduction <add>, %25, %cst_18 [1, 2] : vector<1x8x128xf32> to vector<1xf32>
      %27 = vector.shape_cast %26 : vector<1xf32> to vector<1x1x1xf32>
      %28 = vector.extract %27[0, 0, 0] : f32 from vector<1x1x1xf32>
      %29 = vector.broadcast %28 : f32 to vector<1x8x128xf32>
      %c0_19 = arith.constant 0 : index
      %c0_20 = arith.constant 0 : index
      %c0_21 = arith.constant 0 : index
      %30 = vector.load %arg4[%c0_19, %c0_20, %c0_21] : memref<1x8x128xf32, #tpu.memory_space<vmem>>, vector<1x8x128xf32>
      tpu.vector_store %arg4[%c0_19, %c0_20, %c0_21], %29 {strides = array<i32>} : memref<1x8x128xf32, #tpu.memory_space<vmem>>, vector<1x8x128xf32>,
      %c0_22 = arith.constant 0 : index
      %c0_23 = arith.constant 0 : index
      %31 = vector.load %arg7[%c0_22, %c0_23] : memref<8x128xf32, #tpu.memory_space<vmem>>, vector<8x128xf32>
      %32 = vector.shape_cast %31 : vector<8x128xf32> to vector<1x8x128xf32>
      %cst_24 = arith.constant dense<0.000000e+00> : vector<1xf32>
      %33 = vector.multi_reduction <add>, %32, %cst_24 [1, 2] : vector<1x8x128xf32> to vector<1xf32>
      %34 = vector.shape_cast %33 : vector<1xf32> to vector<1x1x1xf32>
      %35 = vector.extract %34[0, 0, 0] : f32 from vector<1x1x1xf32>
      %36 = vector.broadcast %35 : f32 to vector<1x8x128xf32>
      %c0_25 = arith.constant 0 : index
      %c0_26 = arith.constant 0 : index
      %c0_27 = arith.constant 0 : index
      %37 = vector.load %arg5[%c0_25, %c0_26, %c0_27] : memref<1x8x128xf32, #tpu.memory_space<vmem>>, vector<1x8x128xf32>
      tpu.vector_store %arg5[%c0_25, %c0_26, %c0_27], %36 {strides = array<i32>} : memref<1x8x128xf32, #tpu.memory_space<vmem>>, vector<1x8x128xf32>,
    } else {
    }
    return
  }
  func.func @transform_0(%arg0: i32, %arg1: i32) -> (i32, i32) {
    %c1_i32 = arith.constant 1 : i32
    %0 = arith.muli %arg0, %c1_i32 : i32
    %1 = arith.addi %0, %arg1 : i32
    %c0_i32 = arith.constant 0 : i32
    %2 = arith.minsi %1, %c0_i32 : i32
    %c0_i32_0 = arith.constant 0 : i32
    %c0_i32_1 = arith.constant 0 : i32
    return %2, %c0_i32_0 : i32, i32
  }
  func.func @transform_1(%arg0: i32, %arg1: i32) -> (i32, i32) {
    %c1_i32 = arith.constant 1 : i32
    %0 = arith.muli %arg0, %c1_i32 : i32
    %1 = arith.addi %0, %arg1 : i32
    %c0_i32 = arith.constant 0 : i32
    %2 = arith.minsi %1, %c0_i32 : i32
    %c0_i32_0 = arith.constant 0 : i32
    %c0_i32_1 = arith.constant 0 : i32
    return %2, %c0_i32_0 : i32, i32
  }
  func.func @transform_2(%arg0: i32, %arg1: i32) -> (i32, i32, i32) {
    %c0_i32 = arith.constant 0 : i32
    %c0_i32_0 = arith.constant 0 : i32
    %c0_i32_1 = arith.constant 0 : i32
    return %arg0, %c0_i32, %c0_i32_0 : i32, i32, i32
  }
  func.func @transform_3(%arg0: i32, %arg1: i32) -> (i32, i32, i32) {
    %c0_i32 = arith.constant 0 : i32
    %c0_i32_0 = arith.constant 0 : i32
    %c0_i32_1 = arith.constant 0 : i32
    return %arg0, %c0_i32, %c0_i32_0 : i32, i32, i32
  }
}

</mosaic_0001>

<bundles_post_ra>
// kernel: tpu_custom_call.1
= control target key start
LH: loop header
LB: loop body
LE: loop exit
PB: predicated region body
PF: predicated region fallthrough
CT: control target
= control target key end

     0   :  { %9 = vsyncpa [#allocation5], 0  ;;  %s292_s0 = inlined_call_operand.hbm [shape: f32[16,128], index: 0, kind: input, shape index: {}]   ;;  %s293_s1 = inlined_call_operand.hbm [shape: f32[16,128], index: 1, kind: input, shape index: {}]   ;;  %s294_s2 = inlined_call_operand.hbm [shape: f32[1,8,128], index: 2, kind: output, shape index: {0}]   ;;  %s295_s3 = inlined_call_operand.hbm [shape: f32[1,8,128], index: 3, kind: output, shape index: {1}]  }
   0x1   :  { %10 = vsyncpa [#allocation8], 0 }
   0x2   :  { %11 = vsyncpa [#allocation6], 0 }
   0x3   :  { %12 = vsyncpa [#allocation11], 0  ;;  %s253_s12 = smov [#allocation4]  }
   0x4   :  { %s24_s13 = sshll.u32 %s253_s12, 4  ;;  %s25_s13 = int_to_ptr.vmem [resolvable:$true] %s24_s13 }
   0x5   :  { %s173_s14 = scalar_lea.vmem %s25_s13, 256  ;;  %p178_p1 = scmp.lt.s32.totalorder %s25_s13, %s25_s13 }
   0x6   :  { %p174_p0 = scmp.ne.s32.totalorder %s25_s13, %s173_s14  ;;  %p179_p2 = scmp.lt.s32.totalorder %s173_s14, %s173_s14 }
   0x8   :  { %p180_p3 = por %p179_p2, %p178_p1 }
   0xa   :  { %p181_p4 = pnand %p180_p3, %p174_p0 }
   0xc   :  { %184 = shalt.err (!%p181_p4)
}
   0xd   :  { %s254_s15 = smov 128   ;;  %s255_s16 = smov 8  }
   0xe   :  { %30 = dma.hbm_to_vmem [thread:$0]  %s292_s0, 256, %s25_s13, [#allocation5], %s254_s15, %s254_s15, %s255_s16  }
   0xf   :  { %s256_s19 = smov [#allocation7]  }
  0x10   :  { %s42_s20 = sshll.u32 %s256_s19, 4  ;;  %s43_s20 = int_to_ptr.vmem [resolvable:$true] %s42_s20 }
  0x11   :  { %s193_s21 = scalar_lea.vmem %s43_s20, 256  ;;  %p198_p6 = scmp.lt.s32.totalorder %s43_s20, %s43_s20 }
  0x12   :  { %p194_p5 = scmp.ne.s32.totalorder %s43_s20, %s193_s21  ;;  %p199_p7 = scmp.lt.s32.totalorder %s193_s21, %s193_s21 }
  0x14   :  { %p200_p8 = por %p199_p7, %p198_p6 }
  0x16   :  { %p201_p9 = pnand %p200_p8, %p194_p5 }
  0x18   :  { %204 = shalt.err (!%p201_p9)
}
  0x19   :  { %48 = dma.hbm_to_vmem [thread:$0]  %s293_s1, 256, %s43_s20, [#allocation8], %s254_s15, %s254_s15, %s255_s16  }
  0x1a   :  { %245 = dma.done.wait [#allocation5], 256  }
  0x1b   :  { %246 = vsyncadd [#allocation5], 4294967040 }
  0x1c   :  { %247 = dma.done.wait [#allocation8], 256  }
  0x1d   :  { %248 = vsyncadd [#allocation8], 4294967040  ;;  %v69_v0 = vld [vmem:[#allocation4] sm:$0xff]  ;;  %v70_v1 = vld [vmem:[#allocation4 + $0x8] sm:$0xff]  ;;  %v257_v4 = vmov 0.0   ;;  %s258_s0 = smov [#allocation9]  }
  0x1e   :  { %v77_v2 = vld [vmem:[#allocation7] sm:$0xff]  ;;  %vm71_vm0 = vcmp.gt.f32.partialorder %v69_v0, 0.0  ;;  %vm72_vm1 = vcmp.gt.f32.partialorder %v70_v1, 0.0  ;;  %v78_v3 = vld [vmem:[#allocation7 + $0x8] sm:$0xff]  ;;  %s124_s1 = sshll.u32 %s258_s0, 4  ;;  %s259_s25 = smov [#allocation10]   ;;  %s125_s1 = int_to_ptr.vmem [resolvable:$true] %s124_s1 }
  0x1f   :  { %v152_v5 = vsel %vm71_vm0, 1.0, %v257_v4  ;;  %v153_v6 = vsel %vm72_vm1, 1.0, %v257_v4  ;;  %s134_s26 = sshll.u32 %s259_s25, 4  ;;  %s205_s27 = scalar_lea.vmem %s125_s1, 128  ;;  %s135_s26 = int_to_ptr.vmem [resolvable:$true] %s134_s26 }
  0x20   :  { %v80_v7 = vmul.f32 %v152_v5, %v77_v2  ;;  %v81_v8 = vmul.f32 %v153_v6, %v78_v3  ;;  %v86_v9 = vadd.f32 %v152_v5, %v77_v2  ;;  %v87_v10 = vadd.f32 %v153_v6, %v78_v3  ;;  %p206_p10 = scmp.ne.s32.totalorder %s125_s1, %s205_s27  ;;  %p210_p11 = scmp.lt.s32.totalorder %s125_s1, %s125_s1 }
  0x21   :  { %p211_p12 = scmp.lt.s32.totalorder %s205_s27, %s205_s27 }
  0x22   :  { %v82_v11 = vadd.f32 %v81_v8, %v80_v7  ;;  %v88_v12 = vadd.f32 %v87_v10, %v86_v9 }
  0x23   :  { %p212_p13 = por %p211_p12, %p210_p11 }
  0x24   :  { %95 = vadd.xlane.f32.xlu0 %v82_v11 }
  0x25   :  { %p213_p0 = pnand %p212_p13, %p206_p10 }
  0x28   :  { %107 = vadd.xlane.f32.xlu0 %v88_v12 }
  0xad   :  { %v96_v13 = vpop.xlane.xlu0 %95 }
  0xae   :  { %v97_v14 = vrot.slane %v96_v13, 4 }
  0xb0   :  { %v98_v15 = vadd.f32 %v97_v14, %v96_v13 }
  0xb1   :  { %v108_v16 = vpop.xlane.xlu0 %107 }
  0xb2   :  { %v99_v17 = vrot.slane %v98_v15, 2  ;;  %v109_v18 = vrot.slane %v108_v16, 4 }
  0xb4   :  { %v110_v19 = vadd.f32 %v109_v18, %v108_v16  ;;  %v100_v20 = vadd.f32 %v99_v17, %v98_v15 }
  0xb6   :  { %v111_v21 = vrot.slane %v110_v19, 2  ;;  %v101_v22 = vrot.slane %v100_v20, 1 }
  0xb8   :  { %v112_v23 = vadd.f32 %v111_v21, %v110_v19  ;;  %v102_v24 = vadd.f32 %v101_v22, %v100_v20 }
  0xba   :  { %154 = vpush %v102_v24  ;;  %v113_v25 = vrot.slane %v112_v23, 1 }
  0xbc   :  { %v114_v26 = vadd.f32 %v113_v25, %v112_v23 }
  0xbe   :  { %156 = vpush %v114_v26 }
  0xeb   :  { %s155_s24 = spop %154 }
  0xec   :  { %v104_v27 = vstv %s155_s24 }
  0xed   :  { %105 = vst [vmem:[#allocation9] sm:$0xff] %v104_v27 }
  0xee   :  { %216 = shalt.err (!%p213_p0)
}
  0xef   :  { %127 = dma.vmem_to_hbm [thread:$0]  %s125_s1, 128, %s294_s2, [#allocation6]  }
  0xf0   :  { %s157_s30 = spop %156  ;;  %s225_s4 = scalar_lea.vmem %s135_s26, 128 }
  0xf1   :  { %v116_v28 = vstv %s157_s30  ;;  %p226_p1 = scmp.ne.s32.totalorder %s135_s26, %s225_s4  ;;  %p230_p2 = scmp.lt.s32.totalorder %s135_s26, %s135_s26 }
  0xf2   :  { %117 = vst [vmem:[#allocation10] sm:$0xff] %v116_v28  ;;  %p231_p3 = scmp.lt.s32.totalorder %s225_s4, %s225_s4 }
  0xf4   :  { %p232_p4 = por %p231_p3, %p230_p2 }
  0xf6   :  { %p233_p5 = pnand %p232_p4, %p226_p1 }
  0xf8   :  { %236 = shalt.err (!%p233_p5)
}
  0xf9   :  { %137 = dma.vmem_to_hbm [thread:$0]  %s135_s26, 128, %s295_s3, [#allocation11]  }
  0xfa   :  { %249 = dma.done.wait [#allocation6], 128  }
  0xfb   :  { %250 = vsyncadd [#allocation6], 4294967168 }
  0xfc   :  { %251 = dma.done.wait [#allocation11], 128  }
  0xfd   :  { %252 = vsyncadd [#allocation11], 4294967168 }
  0xfe   :  { %144 = vsyncpa [#allocation5], 1 }
  0xff   :  { %145 = vsyncpa [#allocation8], 1 }
 0x100   :  { %146 = vsyncpa [#allocation6], 1 }
 0x101   :  { %147 = vsyncpa [#allocation11], 1 }

</bundles_post_ra>
